<compile_context>
chip_gen: v7x
topology: tpu7x:2x2x1
jax: 0.10.0
libtpu: 0.0.40
codegen_flags: <defaults>
</compile_context>

<pallas_src>
import functools
import math

import jax
import jax.numpy as jnp
from jax.experimental import pallas as pl
from jax.experimental.pallas import tpu as pltpu

# --------------------------------------------------------------------------
# Module topology (copied from the PyTorch spec)
# --------------------------------------------------------------------------
PASS_ORDER = {
    'A': ['1', '13', '12', '11', '10', '5', '4', '7', '9', '6', '8', '2', '3'],
    'B': ['2', '3', '6', '8', '7', '9', '4', '5', '10', '11', '12', '13', '1'],
}
BOUNDARY = {
    'A': {'1': ['2', '3', '7', '9', '13'], '2': [], '3': [], '4': ['7', '9'],
          '5': ['4'], '6': ['2'], '7': ['6'], '8': ['3'], '9': ['8'],
          '10': ['5'], '11': ['10'], '12': ['11'], '13': ['12']},
    'B': {'1': [], '2': ['1', '6'], '3': ['1', '8'], '4': ['5'], '5': ['10'],
          '6': ['7'], '7': ['1', '4'], '8': ['9'], '9': ['1', '4'],
          '10': ['11'], '11': ['12'], '12': ['13'], '13': ['1']},
}

KSIZE = 7
TAPS = KSIZE * KSIZE
EPS = 1e-5


# --------------------------------------------------------------------------
# Pallas kernels
# --------------------------------------------------------------------------
def _matmul_kernel(a_ref, b_ref, o_ref):
    # a: (M, K) bf16, b: (K, N) bf16  ->  o: (M, N) f32
    o_ref[...] = jnp.dot(a_ref[...], b_ref[...],
                         preferred_element_type=jnp.float32)


def _bn_relu_kernel(x_ref, g_ref, b_ref, o_ref, *, inv_m):
    # Training-mode BatchNorm (batch stats, biased var) + ReLU, fully fused.
    x = x_ref[...]
    mean = jnp.sum(x, axis=0, keepdims=True) * inv_m
    xc = x - mean
    var = jnp.sum(xc * xc, axis=0, keepdims=True) * inv_m
    y = xc * (g_ref[...] * jax.lax.rsqrt(var + EPS)) + b_ref[...]
    o_ref[...] = jnp.maximum(y, 0.0)


def _conv_bn_relu_kernel(a_ref, w_ref, g_ref, b_ref, o_ref, *, inv_m):
    # One passing-module layer 0: im2col matmul + BatchNorm(batch stats) + ReLU.
    y = jnp.dot(a_ref[...], w_ref[...], preferred_element_type=jnp.float32)
    mean = jnp.sum(y, axis=0, keepdims=True) * inv_m
    yc = y - mean
    var = jnp.sum(yc * yc, axis=0, keepdims=True) * inv_m
    z = yc * (g_ref[...] * jax.lax.rsqrt(var + EPS)) + b_ref[...]
    o_ref[...] = jnp.maximum(z, 0.0)


def _bn_relu_matmul_kernel(x_ref, g_ref, b_ref, w_ref, o_ref, *, inv_m):
    # Fused per-class heads: BN(batch stats) + ReLU + block-diagonal 1x1 conv.
    x = x_ref[...]
    mean = jnp.sum(x, axis=0, keepdims=True) * inv_m
    xc = x - mean
    var = jnp.sum(xc * xc, axis=0, keepdims=True) * inv_m
    y = jnp.maximum(xc * (g_ref[...] * jax.lax.rsqrt(var + EPS)) + b_ref[...], 0.0)
    o_ref[...] = jnp.dot(y.astype(w_ref.dtype), w_ref[...],
                         preferred_element_type=jnp.float32)


# --------------------------------------------------------------------------
# Jitted Pallas wrappers (module-level => compiled once per shape, reused)
# --------------------------------------------------------------------------
@jax.jit
def pre_matmul(x2d, w):
    """All 26 prepare 1x1 convs in one MXU call: (M, Cin) @ (Cin, 26*CH)."""
    M, K = x2d.shape
    N = w.shape[1]
    return pl.pallas_call(
        _matmul_kernel,
        out_shape=jax.ShapeDtypeStruct((M, N), jnp.float32),
        grid=(1,),
        in_specs=[pl.BlockSpec((M, K), lambda i: (0, 0)),
                  pl.BlockSpec((K, N), lambda i: (0, 0))],
        out_specs=pl.BlockSpec((M, N), lambda i: (0, 0)),
    )(x2d.astype(jnp.bfloat16), w)


@jax.jit
def bn_relu(x2d, gamma, beta):
    """Fused BatchNorm (batch stats) + ReLU on a (M, C) channels-last slab."""
    M, C = x2d.shape
    return pl.pallas_call(
        functools.partial(_bn_relu_kernel, inv_m=1.0 / M),
        out_shape=jax.ShapeDtypeStruct((M, C), jnp.float32),
        grid=(1,),
        in_specs=[pl.BlockSpec((M, C), lambda i: (0, 0)),
                  pl.BlockSpec((1, C), lambda i: (0, 0)),
                  pl.BlockSpec((1, C), lambda i: (0, 0))],
        out_specs=pl.BlockSpec((M, C), lambda i: (0, 0)),
    )(x2d, gamma, beta)


@jax.jit
def conv_bn_relu_group(cols, w, gamma, beta):
    """Batched passing-module layer 0 over a module grid axis.
    cols: (n, M, 49*Cin) bf16, w: (n, 49*Cin, Cout) bf16 -> (n, M, Cout) f32."""
    n, M, K = cols.shape
    co = w.shape[2]
    return pl.pallas_call(
        functools.partial(_conv_bn_relu_kernel, inv_m=1.0 / M),
        out_shape=jax.ShapeDtypeStruct((n, M, co), jnp.float32),
        grid=(n,),
        in_specs=[pl.BlockSpec((None, M, K), lambda j: (j, 0, 0)),
                  pl.BlockSpec((None, K, co), lambda j: (j, 0, 0)),
                  pl.BlockSpec((None, 1, co), lambda j: (j, 0, 0)),
                  pl.BlockSpec((None, 1, co), lambda j: (j, 0, 0))],
        out_specs=pl.BlockSpec((None, M, co), lambda j: (j, 0, 0)),
        compiler_params=pltpu.CompilerParams(dimension_semantics=("parallel",)),
    )(cols, w, gamma, beta)


@jax.jit
def matmul_group(cols, w):
    """Batched passing-module layer 1 (no BN/ReLU) over a module grid axis."""
    n, M, K = cols.shape
    co = w.shape[2]
    return pl.pallas_call(
        _matmul_kernel,
        out_shape=jax.ShapeDtypeStruct((n, M, co), jnp.float32),
        grid=(n,),
        in_specs=[pl.BlockSpec((None, M, K), lambda j: (j, 0, 0)),
                  pl.BlockSpec((None, K, co), lambda j: (j, 0, 0))],
        out_specs=pl.BlockSpec((None, M, co), lambda j: (j, 0, 0)),
        compiler_params=pltpu.CompilerParams(dimension_semantics=("parallel",)),
    )(cols, w)


@jax.jit
def bn_relu_matmul(x2d, gamma, beta, w):
    """Fused final heads: 416-ch BN + ReLU + block-diagonal (416, 13) matmul."""
    M, C = x2d.shape
    N = w.shape[1]
    return pl.pallas_call(
        functools.partial(_bn_relu_matmul_kernel, inv_m=1.0 / M),
        out_shape=jax.ShapeDtypeStruct((M, N), jnp.float32),
        grid=(1,),
        in_specs=[pl.BlockSpec((M, C), lambda i: (0, 0)),
                  pl.BlockSpec((1, C), lambda i: (0, 0)),
                  pl.BlockSpec((1, C), lambda i: (0, 0)),
                  pl.BlockSpec((C, N), lambda i: (0, 0))],
        out_specs=pl.BlockSpec((M, N), lambda i: (0, 0)),
    )(x2d, gamma, beta, w)


@jax.jit
def im2col7(x5):
    """(G, N, H, W, C) -> (G, N*H*W, 49*C) bf16, tap-major / channel-minor columns.
    # TODO(synk): im2col pad/slice/concat is XLA glue outside the Pallas kernels."""
    G, N, H, W, C = x5.shape
    pad = (KSIZE - 1) // 2
    xp = jnp.pad(x5, ((0, 0), (0, 0), (pad, pad), (pad, pad), (0, 0)))
    cols = [xp[:, :, i:i + H, j:j + W, :]
            for i in range(KSIZE) for j in range(KSIZE)]
    out = jnp.concatenate(cols, axis=-1)
    return out.reshape(G, N * H * W, TAPS * C).astype(jnp.bfloat16)


# --------------------------------------------------------------------------
# Parameter init (matmul-ready layouts; all stacking/padding/casts hoisted here)
# --------------------------------------------------------------------------
class KeyGen:
    def __init__(self, seed):
        self._key = jax.random.PRNGKey(seed)

    def __call__(self):
        self._key, sub = jax.random.split(self._key)
        return sub


def _kaiming_bound(fan_in):
    return math.sqrt(6.0 / fan_in)      # nn.init.kaiming_uniform_ default


def init_passing(kg, inplanes=16, planes=8, step=2):
    """_make_passing (step=2): Conv7x7(in->p) + BN + ReLU + Conv7x7(p->in),
    stored as im2col-ready (49*Cin, Cout) bf16 weights."""
    assert step == 2  # TODO(synk): step > 2 would just chain more grouped conv calls
    b0 = _kaiming_bound(inplanes * TAPS)
    w0 = jax.random.uniform(kg(), (TAPS, inplanes, planes), jnp.float32, -b0, b0)
    b1 = _kaiming_bound(planes * TAPS)
    w1 = jax.random.uniform(kg(), (TAPS, planes, inplanes), jnp.float32, -b1, b1)
    return {
        "w0": w0.reshape(TAPS * inplanes, planes).astype(jnp.bfloat16),
        "g0": jnp.ones((1, planes), jnp.float32),
        "b0": jnp.zeros((1, planes), jnp.float32),
        "w1": w1.reshape(TAPS * planes, inplanes).astype(jnp.bfloat16),
    }


def _stack_group(mods, sel, pad_to):
    """Stack a list of passing modules along a leading module axis, zero-padding
    to a fixed count so every grouped kernel reuses one compiled shape."""
    n = len(mods)
    w0 = jnp.stack([m["w0"] for m in mods], 0)
    g0 = jnp.stack([m["g0"] for m in mods], 0)
    b0 = jnp.stack([m["b0"] for m in mods], 0)
    w1 = jnp.stack([m["w1"] for m in mods], 0)
    if pad_to > n:
        p = pad_to - n
        w0 = jnp.pad(w0, ((0, p), (0, 0), (0, 0)))
        g0 = jnp.pad(g0, ((0, p), (0, 0), (0, 0)))
        b0 = jnp.pad(b0, ((0, p), (0, 0), (0, 0)))
        w1 = jnp.pad(w1, ((0, p), (0, 0), (0, 0)))
        sel = list(sel) + [0] * p
    return {"w0": w0, "g0": g0, "b0": b0, "w1": w1,
            "sel": jnp.asarray(sel, jnp.int32)}


def init_message_passing(seed=0, classes=13, step=2, inchannels=256,
                         channels=16, first=0, last=0):
    kg = KeyGen(seed)
    P = {"classes": classes, "channels": channels, "first": first, "last": last}

    # 2*classes prepare 1x1 convs fused into one (Cin, 2*classes*CH) weight.
    bnd = _kaiming_bound(inchannels)
    P["pre_w"] = jax.random.uniform(
        kg(), (inchannels, 2 * classes * channels), jnp.float32,
        -bnd, bnd).astype(jnp.bfloat16)
    # Fresh BatchNorm (gamma=1, beta=0); the A/B pair is fused into one 2*CH BN.
    P["pre_bn_g"] = jnp.ones((1, 2 * channels), jnp.float32)
    P["pre_bn_b"] = jnp.zeros((1, 2 * channels), jnp.float32)

    # Per-class heads: BN(2*CH) + ReLU + 1x1(2*CH -> 1), fused into one 416-channel
    # BN and one block-diagonal (2*CH*classes, classes) matmul.
    P["aft_g"] = jnp.ones((1, 2 * channels * classes), jnp.float32)
    P["aft_b"] = jnp.zeros((1, 2 * channels * classes), jnp.float32)
    bnd = _kaiming_bound(2 * channels)
    aft = jnp.zeros((2 * channels * classes, classes), jnp.float32)
    for i in range(classes):
        col = jax.random.uniform(kg(), (2 * channels,), jnp.float32, -bnd, bnd)
        aft = aft.at[i * 2 * channels:(i + 1) * 2 * channels, i].set(col)
    P["aft_w"] = aft.astype(jnp.bfloat16)

    # Passing modules, created in the reference order: all branch-A inner passes,
    # then branch-B inner passes, then 2*classes inter passes.
    n_inner_a = sum(len(BOUNDARY['A'][k]) for k in PASS_ORDER['A'])
    n_inner_b = sum(len(BOUNDARY['B'][k]) for k in PASS_ORDER['B'])
    inner_mods = [init_passing(kg, channels, channels // 2, step)
                  for _ in range(n_inner_a + n_inner_b)]
    inter_mods = ([init_passing(kg, channels, channels // 2, step)
                   for _ in range(2 * classes)] if last == 0 else [])

    # Group (per pass-order index) every passing module that consumes that index's
    # prepare output, branches A and B together; pad to a fixed module count.
    nmax = max(len(BOUNDARY['A'][PASS_ORDER['A'][i]])
               + len(BOUNDARY['B'][PASS_ORDER['B'][i]]) for i in range(classes))
    groups = []
    ia, ib = 0, 0
    for i in range(classes):
        kp_a, kp_b = PASS_ORDER['A'][i], PASS_ORDER['B'][i]
        mods, sel, targets = [], [], []
        for tgt in BOUNDARY['A'][kp_a]:
            mods.append(inner_mods[ia]); ia += 1
            sel.append(0); targets.append(('A', tgt))
        for tgt in BOUNDARY['B'][kp_b]:
            mods.append(inner_mods[n_inner_a + ib]); ib += 1
            sel.append(1); targets.append(('B', tgt))
        if mods:
            g = _stack_group(mods, sel, nmax)
            g["targets"] = targets
        else:
            g = None
        groups.append(g)
    P["inner_groups"] = groups

    if last == 0:
        mods, sel, targets = [], [], []
        for i in range(classes):
            mods.append(inter_mods[i])
            sel.append(i); targets.append(('A', PASS_ORDER['A'][i]))
        for i in range(classes):
            mods.append(inter_mods[classes + i])
            sel.append(classes + i); targets.append(('B', PASS_ORDER['B'][i]))
        g = _stack_group(mods, sel, len(mods))
        g["targets"] = targets
        P["inter_group"] = g
    else:
        P["inter_group"] = None
    return P


# --------------------------------------------------------------------------
# MessagePassing forward
# --------------------------------------------------------------------------
def message_passing_forward(P, x, ahead_msg):
    classes, CH = P["classes"], P["channels"]
    first, last = P["first"], P["last"]
    N, Ci, H, W = x.shape
    M = N * H * W

    def to2d(t):                                  # NCHW -> (M, C) channels-last flat
        return jnp.transpose(t, (0, 2, 3, 1)).reshape(M, t.shape[1])

    def to4d(t2):                                 # (M, C) -> NCHW
        return t2.reshape(N, H, W, t2.shape[1]).transpose(0, 3, 1, 2)

    pre_all = pre_matmul(to2d(x), P["pre_w"])     # (M, 2*classes*CH), one MXU call

    msg_box = {'A': {str(i + 1): [] for i in range(classes)},
               'B': {str(i + 1): [] for i in range(classes)}}
    results = {'A': {}, 'B': {}}

    for i in range(classes):
        kp_a, kp_b = PASS_ORDER['A'][i], PASS_ORDER['B'][i]
        out_a = pre_all[:, i * CH:(i + 1) * CH]
        out_b = pre_all[:, (classes + i) * CH:(classes + i + 1) * CH]
        # TODO(synk): incoming-message sums stay as tiny XLA adds (0-5 per keypoint).
        for m in msg_box['A'][kp_a]:
            out_a = out_a + m
        for m in msg_box['B'][kp_b]:
            out_b = out_b + m
        if first == 0:
            out_a = out_a + to2d(ahead_msg['A'][kp_a][0])
            out_b = out_b + to2d(ahead_msg['B'][kp_b][0])
        # Branches A and B are independent -> one fused 2*CH-channel BN+ReLU call.
        y = bn_relu(jnp.concatenate([out_a, out_b], axis=1),
                    P["pre_bn_g"], P["pre_bn_b"])
        res_a, res_b = y[:, :CH], y[:, CH:]
        results['A'][kp_a] = res_a
        results['B'][kp_b] = res_b

        grp = P["inner_groups"][i]
        if grp is not None:
            both = jnp.stack([res_a, res_b], axis=0).reshape(2, N, H, W, CH)
            cols_ab = im2col7(both)                           # (2, M, 49*CH)
            cols0 = jnp.take(cols_ab, grp["sel"], axis=0)     # (nmax, M, 49*CH)
            mid = conv_bn_relu_group(cols0, grp["w0"], grp["g0"], grp["b0"])
            cols1 = im2col7(mid.reshape(mid.shape[0], N, H, W, mid.shape[-1]))
            outs = matmul_group(cols1, grp["w1"])             # (nmax, M, CH)
            for j, (br, tgt) in enumerate(grp["targets"]):
                msg_box[br][tgt].append(outs[j])

    # Inter-level messages: all 2*classes passing modules batched in one group.
    inter_level_msg = {'A': {str(i + 1): [] for i in range(classes)},
                       'B': {str(i + 1): [] for i in range(classes)}}
    if last == 0:
        g = P["inter_group"]
        stack = jnp.stack(
            [results['A'][PASS_ORDER['A'][i]] for i in range(classes)]
            + [results['B'][PASS_ORDER['B'][i]] for i in range(classes)], axis=0)
        cols_all = im2col7(stack.reshape(2 * classes, N, H, W, CH))
        cols0 = jnp.take(cols_all, g["sel"], axis=0)
        mid = conv_bn_relu_group(cols0, g["w0"], g["g0"], g["b0"])
        cols1 = im2col7(mid.reshape(mid.shape[0], N, H, W, mid.shape[-1]))
        outs = matmul_group(cols1, g["w1"])                   # (26, M, CH)
        for j, (br, kp) in enumerate(g["targets"]):
            inter_level_msg[br][kp].append(to4d(outs[j]))

    # Final heads: one fused 2*CH*classes BN+ReLU + block-diagonal 1x1 matmul whose
    # output IS the channel-concatenated feature map (lane-dense input slab).
    cat_all = jnp.concatenate(
        [jnp.concatenate([results['A'][str(k + 1)], results['B'][str(k + 1)]], axis=1)
         for k in range(classes)], axis=1)                    # (M, 2*CH*classes)
    fm = bn_relu_matmul(cat_all, P["aft_g"], P["aft_b"], P["aft_w"])   # (M, classes)
    feature_map = to4d(fm)

    if last == 0:
        return feature_map, inter_level_msg
    return feature_map


# --------------------------------------------------------------------------
# Demo
# --------------------------------------------------------------------------
if __name__ == "__main__":
    N, H, W = 2, 8, 8
    INCH, CH, CLASSES = 64, 16, 13   # channels=16 fixed by _make_passing(inplanes=16)

    kg = KeyGen(0)                   # inputs from jax.random.PRNGKey(0)
    x = jax.random.normal(kg(), (N, INCH, H, W), jnp.float32)
    ahead_msg = {br: {str(i + 1): [0.1 * jax.random.normal(
        kg(), (N, CH, H, W), jnp.float32)] for i in range(CLASSES)}
        for br in ('A', 'B')}

    params = init_message_passing(seed=1234, classes=CLASSES, step=2,
                                  inchannels=INCH, channels=CH, first=0, last=0)

    feature_map, inter_level_msg = message_passing_forward(params, x, ahead_msg)
    feature_map = jax.block_until_ready(feature_map)

    assert feature_map.shape == (N, CLASSES, H, W), feature_map.shape
    assert bool(jnp.all(jnp.isfinite(feature_map)))
    msg = jax.block_until_ready(inter_level_msg['A']['1'][0])
    assert msg.shape == (N, CH, H, W), msg.shape
    assert bool(jnp.all(jnp.isfinite(msg)))
    print("KERNEL_OK")
</pallas_src>

<mosaic_0001>
module attributes {stable_mosaic.version = 11 : i64} {
  func.func @_matmul_kernel(%arg0: i32, %arg1: memref<128x64xbf16, #tpu.memory_space<vmem>>, %arg2: memref<64x416xbf16, #tpu.memory_space<vmem>>, %arg3: memref<128x416xf32, #tpu.memory_space<vmem>>) attributes {dimension_semantics = [#tpu.dimension_semantics<arbitrary>], iteration_bounds = array<i64: 1>, scalar_prefetch = 0 : i64, scratch_operands = 0 : i64, tpu.core_type = #tpu.core_type<tc>, window_params = [{pipeline_mode = #tpu.pipeline_mode<synchronous>, transform_indices = @transform_0, window_bounds = array<i64: 128, 64>}, {pipeline_mode = #tpu.pipeline_mode<synchronous>, transform_indices = @transform_1, window_bounds = array<i64: 64, 416>}, {pipeline_mode = #tpu.pipeline_mode<synchronous>, transform_indices = @transform_2, window_bounds = array<i64: 128, 416>}]} {
    %c0 = arith.constant 0 : index
    %c0_0 = arith.constant 0 : index
    %0 = vector.load %arg1[%c0, %c0_0] : memref<128x64xbf16, #tpu.memory_space<vmem>>, vector<128x64xbf16>
    %c0_1 = arith.constant 0 : index
    %c0_2 = arith.constant 0 : index
    %1 = vector.load %arg2[%c0_1, %c0_2] : memref<64x416xbf16, #tpu.memory_space<vmem>>, vector<64x416xbf16>
    %cst = arith.constant dense<0.000000e+00> : vector<128x416xf32>
    %2 = tpu.matmul %0, %1, %cst {dimension_numbers = #tpu.dot_dimension_numbers<[1], [0], [0], [1], [0, 0, 1, 1], [], []>} : vector<128x64xbf16>, vector<64x416xbf16>, vector<128x416xf32> -> vector<128x416xf32>
    %c0_3 = arith.constant 0 : index
    %c0_4 = arith.constant 0 : index
    %3 = vector.load %arg3[%c0_3, %c0_4] : memref<128x416xf32, #tpu.memory_space<vmem>>, vector<128x416xf32>
    tpu.vector_store %arg3[%c0_3, %c0_4], %2 {strides = array<i32>} : memref<128x416xf32, #tpu.memory_space<vmem>>, vector<128x416xf32>,
    return
  }
  func.func @transform_0(%arg0: i32) -> (i32, i32) {
    %c0_i32 = arith.constant 0 : i32
    %c0_i32_0 = arith.constant 0 : i32
    %c0_i32_1 = arith.constant 0 : i32
    return %c0_i32, %c0_i32_0 : i32, i32
  }
  func.func @transform_1(%arg0: i32) -> (i32, i32) {
    %c0_i32 = arith.constant 0 : i32
    %c0_i32_0 = arith.constant 0 : i32
    %c0_i32_1 = arith.constant 0 : i32
    return %c0_i32, %c0_i32_0 : i32, i32
  }
  func.func @transform_2(%arg0: i32) -> (i32, i32) {
    %c0_i32 = arith.constant 0 : i32
    %c0_i32_0 = arith.constant 0 : i32
    %c0_i32_1 = arith.constant 0 : i32
    return %c0_i32, %c0_i32_0 : i32, i32
  }
}

</mosaic_0001>

<bundles_post_ra>
// kernel: pre_matmul.1
= control target key start
LH: loop header
LB: loop body
LE: loop exit
PB: predicated region body
PF: predicated region fallthrough
CT: control target
= control target key end

     0   :  { %v557_v1 = vmov 0   ;;  %vm164_vm0 = vcmask 523264   ;;  %vm418_vm1 = vcmask 261120   ;;  %s885_s1 = inlined_call_operand.vmem [shape: bf16[64,416], index: 1, kind: input, shape index: {}]   ;;  %s886_s0 = inlined_call_operand.vmem [shape: bf16[128,64], index: 0, kind: input, shape index: {}]   ;;  %s887_s2 = inlined_call_operand.vmem [shape: f32[128,416], index: 2, kind: output, shape index: {}]  }
   0x1   :  { %v525_v0 = vld [vmem:[%s885_s1 + $0x4] ss:$16 sps:$4 sm:$0xff]   ;;  %221 = vmatprep.mubr.bf16.mxu0 %v557_v1  ;;  %334 = vmatprep.mubr.bf16.mxu1 %v557_v1  ;;  %v527_v2 = vld [vmem:[%s885_s1 + $0xc] ss:$16 sps:$4 sm:$0xff]   ;;  %v529_v3 = vld [vmem:[%s885_s1] ss:$16 sps:$4 sm:$0xff]  }
   0x2   :  { %189 = vmatprep.subr.bf16.mxu0 %v525_v0  ;;  %v530_v4 = vld [vmem:[%s885_s1 + $0x8] ss:$16 sps:$4 sm:$0xff]   ;;  %302 = vmatprep.subr.bf16.mxu1 %v527_v2  ;;  %v531_v5 = vld [vmem:[%s885_s1 + $0x24] ss:$16 sps:$4 sm:$0xff]   ;;  %v533_v6 = vld [vmem:[%s885_s1 + $0x2c] ss:$16 sps:$4 sm:$0xff]  }
   0x3   :  { %190 = vmatpush1.bf16.msra.mxu0 %v529_v3  ;;  %303 = vmatpush1.bf16.msra.mxu1 %v530_v4  ;;  %v535_v7 = vld [vmem:[%s885_s1 + $0x20] ss:$16 sps:$4 sm:$0xff]   ;;  %v536_v8 = vld [vmem:[%s885_s1 + $0x28] ss:$16 sps:$4 sm:$0xff]   ;;  %v537_v9 = vld [vmem:[%s885_s1 + $0x44] ss:$16 sps:$4 sm:$0xff]  }
   0x4   :  { %191 = vmatprep.subr.bf16.mxu0 %v531_v5  ;;  %304 = vmatprep.subr.bf16.mxu1 %v533_v6  ;;  %v539_v10 = vld [vmem:[%s885_s1 + $0x4c] ss:$16 sps:$4 sm:$0xff]   ;;  %v541_v11 = vld [vmem:[%s885_s1 + $0x40] ss:$16 sps:$4 sm:$0xff]   ;;  %v542_v12 = vld [vmem:[%s885_s1 + $0x48] ss:$16 sps:$4 sm:$0xff]  }
   0x5   :  { %v543_v13 = vld [vmem:[%s885_s1 + $0x64] ss:$16 sps:$4 sm:$0xff]   ;;  %v545_v14 = vld [vmem:[%s885_s1 + $0x6c] ss:$16 sps:$4 sm:$0xff]   ;;  %v547_v15 = vld [vmem:[%s885_s1 + $0x60] ss:$16 sps:$4 sm:$0xff]  }
   0x6   :  { %v548_v16 = vld [vmem:[%s885_s1 + $0x68] ss:$16 sps:$4 sm:$0xff]   ;;  %v549_v17 = vld [vmem:[%s886_s0] sm:$0xff]   ;;  %v551_v19 = vld [vmem:[%s886_s0 + $0x10] sm:$0xff]  }
   0x7   :  { %192 = vmatpush1.bf16.msra.mxu0 %v535_v7  ;;  %305 = vmatpush1.bf16.msra.mxu1 %v536_v8  ;;  %v550_v18 = vld [vmem:[%s886_s0 + $0x8] sm:$0xff]   ;;  %v552_v20 = vld [vmem:[%s886_s0 + $0x18] sm:$0xff]   ;;  %v553_v21 = vld [vmem:[%s886_s0 + $0x20] sm:$0xff]  }
   0x8   :  { %193 = vmatprep.subr.bf16.mxu0 %v537_v9  ;;  %306 = vmatprep.subr.bf16.mxu1 %v539_v10  ;;  %v554_v22 = vld [vmem:[%s886_s0 + $0x28] sm:$0xff]   ;;  %v555_v23 = vld [vmem:[%s886_s0 + $0x30] sm:$0xff]   ;;  %v556_v24 = vld [vmem:[%s886_s0 + $0x38] sm:$0xff]  }
   0xb   :  { %194 = vmatpush1.bf16.msra.mxu0 %v541_v11  ;;  %307 = vmatpush1.bf16.msra.mxu1 %v542_v12 }
   0xc   :  { %195 = vmatprep.subr.bf16.mxu0 %v543_v13  ;;  %308 = vmatprep.subr.bf16.mxu1 %v545_v14 }
   0xf   :  { %196 = vmatpush1.bf16.msra.mxu0 %v547_v15  ;;  %309 = vmatpush1.bf16.msra.mxu1 %v548_v16 }
  0x12   :  { %508 = vmatmul.mubr.msk.bf16.vlgmr.msra.gmra.mrb[0].mxu0 %vm164_vm0, %v549_v17  ;;  %516 = vmatmul.mubr.msk.bf16.vlgmr.msra.gmra.mrb[0].mxu1 %vm164_vm0, %v549_v17 }
  0x13   :  { %231 = vmatprep.mubr.bf16.mxu0 %v557_v1  ;;  %344 = vmatprep.mubr.bf16.mxu1 %v557_v1 }
  0x1a   :  { %509 = vmatmul.mubr.msk.bf16.gmra.mrb[4].mxu0 %vm164_vm0, %v550_v18  ;;  %517 = vmatmul.mubr.msk.bf16.gmra.mrb[4].mxu1 %vm164_vm0, %v550_v18 }
  0x1b   :  { %241 = vmatprep.mubr.bf16.mxu0 %v557_v1  ;;  %354 = vmatprep.mubr.bf16.mxu1 %v557_v1 }
  0x22   :  { %510 = vmatmul.mubr.msk.bf16.gmra.mrb[8].mxu0 %vm164_vm0, %v551_v19  ;;  %518 = vmatmul.mubr.msk.bf16.gmra.mrb[8].mxu1 %vm164_vm0, %v551_v19 }
  0x23   :  { %251 = vmatprep.mubr.bf16.mxu0 %v557_v1  ;;  %364 = vmatprep.mubr.bf16.mxu1 %v557_v1 }
  0x2a   :  { %511 = vmatmul.mubr.msk.bf16.gmra.mrb[12].mxu0 %vm164_vm0, %v552_v20  ;;  %519 = vmatmul.mubr.msk.bf16.gmra.mrb[12].mxu1 %vm164_vm0, %v552_v20 }
  0x2b   :  { %261 = vmatprep.mubr.bf16.mxu0 %v557_v1  ;;  %374 = vmatprep.mubr.bf16.mxu1 %v557_v1 }
  0x32   :  { %512 = vmatmul.mubr.msk.bf16.gmra.mrb[16].mxu0 %vm164_vm0, %v553_v21  ;;  %520 = vmatmul.mubr.msk.bf16.gmra.mrb[16].mxu1 %vm164_vm0, %v553_v21 }
  0x33   :  { %271 = vmatprep.mubr.bf16.mxu0 %v557_v1  ;;  %384 = vmatprep.mubr.bf16.mxu1 %v557_v1 }
  0x3a   :  { %513 = vmatmul.mubr.msk.bf16.gmra.mrb[20].mxu0 %vm164_vm0, %v554_v22  ;;  %521 = vmatmul.mubr.msk.bf16.gmra.mrb[20].mxu1 %vm164_vm0, %v554_v22 }
  0x3b   :  { %281 = vmatprep.mubr.bf16.mxu0 %v557_v1  ;;  %394 = vmatprep.mubr.bf16.mxu1 %v557_v1 }
  0x42   :  { %514 = vmatmul.mubr.msk.bf16.gmra.mrb[24].mxu0 %vm164_vm0, %v555_v23  ;;  %522 = vmatmul.mubr.msk.bf16.gmra.mrb[24].mxu1 %vm164_vm0, %v555_v23 }
  0x43   :  { %291 = vmatprep.mubr.bf16.mxu0 %v557_v1  ;;  %404 = vmatprep.mubr.bf16.mxu1 %v557_v1 }
  0x4a   :  { %515 = vmatmul.mubr.msk.bf16.gmra.mrb[28].mxu0 %vm164_vm0, %v556_v24  ;;  %523 = vmatmul.mubr.msk.bf16.gmra.mrb[28].mxu1 %vm164_vm0, %v556_v24 }
  0xe5   :  { %v223_v25 = vpop.f32.mrb[0].mxu0  ;;  %v336_v26 = vpop.f32.mrb[0].mxu1 }
  0xe6   :  { %415 = vst [vmem:[%s887_s2] sm:$0xff] %v223_v25  ;;  %417 = vst [vmem:[%s887_s2 + $0x10] sm:$0xff] %v336_v26  ;;  %v225_v27 = vpop.f32.mrb[1].mxu0  ;;  %v338_v28 = vpop.f32.mrb[1].mxu1 }
  0xe7   :  { %416 = vst [vmem:[%s887_s2 + $0x8] sm:$0xff] %v225_v27  ;;  %419 = vst.msk [vmem:[%s887_s2 + $0x18] sm:$0xff] %vm418_vm1, %v338_v28  ;;  %v227_v29 = vpop.f32.mrb[2].mxu0  ;;  %v340_v30 = vpop.f32.mrb[2].mxu1 }
  0xe8   :  { %420 = vst [vmem:[%s887_s2 + $0x20] sm:$0xff] %v227_v29  ;;  %422 = vst [vmem:[%s887_s2 + $0x30] sm:$0xff] %v340_v30  ;;  %v229_v31 = vpop.f32.mrb[3].mxu0  ;;  %v342_v32 = vpop.f32.mrb[3].mxu1 }
  0xe9   :  { %421 = vst [vmem:[%s887_s2 + $0x28] sm:$0xff] %v229_v31  ;;  %423 = vst.msk [vmem:[%s887_s2 + $0x38] sm:$0xff] %vm418_vm1, %v342_v32 }
  0xed   :  { %v233_v33 = vpop.f32.mrb[4].mxu0  ;;  %v346_v34 = vpop.f32.mrb[4].mxu1 }
  0xee   :  { %424 = vst [vmem:[%s887_s2 + $0x40] sm:$0xff] %v233_v33  ;;  %426 = vst [vmem:[%s887_s2 + $0x50] sm:$0xff] %v346_v34  ;;  %v235_v35 = vpop.f32.mrb[5].mxu0  ;;  %v348_v36 = vpop.f32.mrb[5].mxu1 }
  0xef   :  { %425 = vst [vmem:[%s887_s2 + $0x48] sm:$0xff] %v235_v35  ;;  %427 = vst.msk [vmem:[%s887_s2 + $0x58] sm:$0xff] %vm418_vm1, %v348_v36  ;;  %v237_v37 = vpop.f32.mrb[6].mxu0  ;;  %v350_v38 = vpop.f32.mrb[6].mxu1 }
  0xf0   :  { %428 = vst [vmem:[%s887_s2 + $0x60] sm:$0xff] %v237_v37  ;;  %430 = vst [vmem:[%s887_s2 + $0x70] sm:$0xff] %v350_v38  ;;  %v239_v39 = vpop.f32.mrb[7].mxu0  ;;  %v352_v40 = vpop.f32.mrb[7].mxu1 }
  0xf1   :  { %429 = vst [vmem:[%s887_s2 + $0x68] sm:$0xff] %v239_v39  ;;  %431 = vst.msk [vmem:[%s887_s2 + $0x78] sm:$0xff] %vm418_vm1, %v352_v40 }
  0xf5   :  { %v243_v41 = vpop.f32.mrb[8].mxu0  ;;  %v356_v42 = vpop.f32.mrb[8].mxu1 }
  0xf6   :  { %432 = vst [vmem:[%s887_s2 + $0x80] sm:$0xff] %v243_v41  ;;  %434 = vst [vmem:[%s887_s2 + $0x90] sm:$0xff] %v356_v42  ;;  %v245_v43 = vpop.f32.mrb[9].mxu0  ;;  %v358_v44 = vpop.f32.mrb[9].mxu1 }
  0xf7   :  { %433 = vst [vmem:[%s887_s2 + $0x88] sm:$0xff] %v245_v43  ;;  %435 = vst.msk [vmem:[%s887_s2 + $0x98] sm:$0xff] %vm418_vm1, %v358_v44  ;;  %v247_v45 = vpop.f32.mrb[10].mxu0  ;;  %v360_v46 = vpop.f32.mrb[10].mxu1 }
  0xf8   :  { %436 = vst [vmem:[%s887_s2 + $0xa0] sm:$0xff] %v247_v45  ;;  %438 = vst [vmem:[%s887_s2 + $0xb0] sm:$0xff] %v360_v46  ;;  %v249_v47 = vpop.f32.mrb[11].mxu0  ;;  %v362_v48 = vpop.f32.mrb[11].mxu1 }
  0xf9   :  { %437 = vst [vmem:[%s887_s2 + $0xa8] sm:$0xff] %v249_v47  ;;  %439 = vst.msk [vmem:[%s887_s2 + $0xb8] sm:$0xff] %vm418_vm1, %v362_v48 }
  0xfd   :  { %v253_v49 = vpop.f32.mrb[12].mxu0  ;;  %v366_v50 = vpop.f32.mrb[12].mxu1 }
  0xfe   :  { %440 = vst [vmem:[%s887_s2 + $0xc0] sm:$0xff] %v253_v49  ;;  %442 = vst [vmem:[%s887_s2 + $0xd0] sm:$0xff] %v366_v50  ;;  %v255_v51 = vpop.f32.mrb[13].mxu0  ;;  %v368_v52 = vpop.f32.mrb[13].mxu1 }
  0xff   :  { %441 = vst [vmem:[%s887_s2 + $0xc8] sm:$0xff] %v255_v51  ;;  %443 = vst.msk [vmem:[%s887_s2 + $0xd8] sm:$0xff] %vm418_vm1, %v368_v52  ;;  %v257_v53 = vpop.f32.mrb[14].mxu0  ;;  %v370_v54 = vpop.f32.mrb[14].mxu1 }
 0x100   :  { %444 = vst [vmem:[%s887_s2 + $0xe0] sm:$0xff] %v257_v53  ;;  %446 = vst [vmem:[%s887_s2 + $0xf0] sm:$0xff] %v370_v54  ;;  %v259_v55 = vpop.f32.mrb[15].mxu0  ;;  %v372_v56 = vpop.f32.mrb[15].mxu1 }
 0x101   :  { %445 = vst [vmem:[%s887_s2 + $0xe8] sm:$0xff] %v259_v55  ;;  %447 = vst.msk [vmem:[%s887_s2 + $0xf8] sm:$0xff] %vm418_vm1, %v372_v56 }
 0x105   :  { %v263_v57 = vpop.f32.mrb[16].mxu0  ;;  %v376_v58 = vpop.f32.mrb[16].mxu1 }
 0x106   :  { %448 = vst [vmem:[%s887_s2 + $0x100] sm:$0xff] %v263_v57  ;;  %450 = vst [vmem:[%s887_s2 + $0x110] sm:$0xff] %v376_v58  ;;  %v265_v59 = vpop.f32.mrb[17].mxu0  ;;  %v378_v60 = vpop.f32.mrb[17].mxu1 }
 0x107   :  { %449 = vst [vmem:[%s887_s2 + $0x108] sm:$0xff] %v265_v59  ;;  %451 = vst.msk [vmem:[%s887_s2 + $0x118] sm:$0xff] %vm418_vm1, %v378_v60  ;;  %v267_v61 = vpop.f32.mrb[18].mxu0  ;;  %v380_v62 = vpop.f32.mrb[18].mxu1 }
 0x108   :  { %452 = vst [vmem:[%s887_s2 + $0x120] sm:$0xff] %v267_v61  ;;  %454 = vst [vmem:[%s887_s2 + $0x130] sm:$0xff] %v380_v62  ;;  %v269_v63 = vpop.f32.mrb[19].mxu0  ;;  %v382_v0 = vpop.f32.mrb[19].mxu1 }
 0x109   :  { %453 = vst [vmem:[%s887_s2 + $0x128] sm:$0xff] %v269_v63  ;;  %455 = vst.msk [vmem:[%s887_s2 + $0x138] sm:$0xff] %vm418_vm1, %v382_v0 }
 0x10d   :  { %v273_v1 = vpop.f32.mrb[20].mxu0  ;;  %v386_v2 = vpop.f32.mrb[20].mxu1 }
 0x10e   :  { %456 = vst [vmem:[%s887_s2 + $0x140] sm:$0xff] %v273_v1  ;;  %458 = vst [vmem:[%s887_s2 + $0x150] sm:$0xff] %v386_v2  ;;  %v275_v3 = vpop.f32.mrb[21].mxu0  ;;  %v388_v4 = vpop.f32.mrb[21].mxu1 }
 0x10f   :  { %457 = vst [vmem:[%s887_s2 + $0x148] sm:$0xff] %v275_v3  ;;  %459 = vst.msk [vmem:[%s887_s2 + $0x158] sm:$0xff] %vm418_vm1, %v388_v4  ;;  %v277_v5 = vpop.f32.mrb[22].mxu0  ;;  %v390_v6 = vpop.f32.mrb[22].mxu1 }
 0x110   :  { %460 = vst [vmem:[%s887_s2 + $0x160] sm:$0xff] %v277_v5  ;;  %462 = vst [vmem:[%s887_s2 + $0x170] sm:$0xff] %v390_v6  ;;  %v279_v7 = vpop.f32.mrb[23].mxu0  ;;  %v392_v8 = vpop.f32.mrb[23].mxu1 }
 0x111   :  { %461 = vst [vmem:[%s887_s2 + $0x168] sm:$0xff] %v279_v7  ;;  %463 = vst.msk [vmem:[%s887_s2 + $0x178] sm:$0xff] %vm418_vm1, %v392_v8 }
 0x115   :  { %v283_v9 = vpop.f32.mrb[24].mxu0  ;;  %v396_v10 = vpop.f32.mrb[24].mxu1 }
 0x116   :  { %464 = vst [vmem:[%s887_s2 + $0x180] sm:$0xff] %v283_v9  ;;  %466 = vst [vmem:[%s887_s2 + $0x190] sm:$0xff] %v396_v10  ;;  %v285_v11 = vpop.f32.mrb[25].mxu0  ;;  %v398_v12 = vpop.f32.mrb[25].mxu1 }
 0x117   :  { %465 = vst [vmem:[%s887_s2 + $0x188] sm:$0xff] %v285_v11  ;;  %467 = vst.msk [vmem:[%s887_s2 + $0x198] sm:$0xff] %vm418_vm1, %v398_v12  ;;  %v287_v13 = vpop.f32.mrb[26].mxu0  ;;  %v400_v14 = vpop.f32.mrb[26].mxu1 }
 0x118   :  { %468 = vst [vmem:[%s887_s2 + $0x1a0] sm:$0xff] %v287_v13  ;;  %470 = vst [vmem:[%s887_s2 + $0x1b0] sm:$0xff] %v400_v14  ;;  %v289_v15 = vpop.f32.mrb[27].mxu0  ;;  %v402_v16 = vpop.f32.mrb[27].mxu1 }
 0x119   :  { %469 = vst [vmem:[%s887_s2 + $0x1a8] sm:$0xff] %v289_v15  ;;  %471 = vst.msk [vmem:[%s887_s2 + $0x1b8] sm:$0xff] %vm418_vm1, %v402_v16 }
 0x11d   :  { %v293_v17 = vpop.f32.mrb[28].mxu0  ;;  %v406_v18 = vpop.f32.mrb[28].mxu1 }
 0x11e   :  { %472 = vst [vmem:[%s887_s2 + $0x1c0] sm:$0xff] %v293_v17  ;;  %474 = vst [vmem:[%s887_s2 + $0x1d0] sm:$0xff] %v406_v18  ;;  %v295_v19 = vpop.f32.mrb[29].mxu0  ;;  %v408_v20 = vpop.f32.mrb[29].mxu1 }
 0x11f   :  { %473 = vst [vmem:[%s887_s2 + $0x1c8] sm:$0xff] %v295_v19  ;;  %475 = vst.msk [vmem:[%s887_s2 + $0x1d8] sm:$0xff] %vm418_vm1, %v408_v20  ;;  %v297_v21 = vpop.f32.mrb[30].mxu0  ;;  %v410_v22 = vpop.f32.mrb[30].mxu1 }
 0x120   :  { %476 = vst [vmem:[%s887_s2 + $0x1e0] sm:$0xff] %v297_v21  ;;  %478 = vst [vmem:[%s887_s2 + $0x1f0] sm:$0xff] %v410_v22  ;;  %v299_v23 = vpop.f32.mrb[31].mxu0  ;;  %v412_v24 = vpop.f32.mrb[31].mxu1 }
 0x121   :  { %477 = vst [vmem:[%s887_s2 + $0x1e8] sm:$0xff] %v299_v23  ;;  %479 = vst.msk [vmem:[%s887_s2 + $0x1f8] sm:$0xff] %vm418_vm1, %v412_v24 }

</bundles_post_ra>
